<compile_context>
chip_gen: v6e
topology: v6e:2x2x1
jax: 0.10.0
libtpu: 0.0.40
codegen_flags: <defaults>
</compile_context>

<pallas_src>
import jax
import jax.numpy as jnp
from jax import lax
from jax.experimental import pallas as pl
from jax.experimental.pallas import tpu as pltpu


# ----------------------------------------------------------------------------
# Pallas kernel: per-mode complex contraction  out[m,b,o] = sum_i a[m,b,i]*w[m,i,o]
# Stacked-LHS form: pr = [ar;ai] @ wr, pi = [ar;ai] @ wi, then
#   re = ar@wr - ai@wi = pr[:B] - pi[B:]
#   im = ar@wi + ai@wr = pi[:B] + pr[B:]
# ----------------------------------------------------------------------------
def _spectral_mul_kernel(a_ref, wr_ref, wi_ref, o_ref):
    a = a_ref[...]                      # (TM, 2B, Cin) f32
    wr = wr_ref[...].astype(a.dtype)    # (TM, Cin, Cout); cheap VPU cast if bf16 in HBM
    wi = wi_ref[...].astype(a.dtype)

    dn = (((2,), (1,)), ((0,), (0,)))   # contract Cin; batch over the mode axis
    pr = lax.dot_general(a, wr, dn, preferred_element_type=jnp.float32)  # (TM, 2B, Cout)
    pi = lax.dot_general(a, wi, dn, preferred_element_type=jnp.float32)

    b = a_ref.shape[1] // 2
    o_ref[:, :b, :] = (pr[:, :b, :] - pi[:, b:, :]).astype(o_ref.dtype)  # real rows
    o_ref[:, b:, :] = (pi[:, :b, :] + pr[:, b:, :]).astype(o_ref.dtype)  # imag rows


def _largest_divisor_leq(m, cap):
    cap = max(1, min(m, cap))
    for d in range(cap, 0, -1):
        if m % d == 0:
            return d
    return 1


def _vmem_limit_bytes():
    # Generation-aware scoped-VMEM limit: ~70% of physical VMEM per TensorCore
    # (v7x: 64 MiB -> ~45 MiB; v5e/v6e: 128 MiB -> ~90 MiB), capped at 100 MiB.
    try:
        cap = int(pltpu.get_tpu_info().vmem_capacity_bytes)
    except Exception:
        cap = 64 * 1024 * 1024          # conservative fallback (v7x per-TC VMEM)
    return min(int(cap * 0.70), 100 * 1024 * 1024)


def _pick_tile_m(M, B2, Cin, Cout, a_itemsize, w_itemsize, vmem_limit, tile_m=None):
    # Per-mode VMEM footprint: double-buffered input/weight/output blocks plus
    # the two (TM, 2B, Cout) f32 matmul results living in the kernel body.
    per_mode = (2 * (B2 * Cin * a_itemsize          # a_s block, x2 buffers
                     + 2 * Cin * Cout * w_itemsize  # w_r + w_i blocks, x2 buffers
                     + B2 * Cout * 4)               # output block, x2 buffers
                + 2 * B2 * Cout * 4)                # pr / pi temporaries (single copy)
    cap = max(1, int(vmem_limit * 0.7) // per_mode)
    if tile_m is not None:
        cap = min(cap, int(tile_m))
    # Divisor of M: no padded zero modes -> no wasted weight DMA / MXU work.
    return _largest_divisor_leq(M, cap)


def _spectral_mul_pallas(a_s, w_r, w_i, tile_m, vmem_limit):
    """a_s: (M, 2B, Cin), w_*: (M, Cin, Cout) -> o: (M, 2B, Cout) f32."""
    M, B2, Cin = a_s.shape
    Cout = w_r.shape[-1]
    assert M % tile_m == 0
    grid = (M // tile_m,)

    # Trailing block dims == full array dims, so no (8,128) padding is required
    # and nothing is padded in HBM.
    a_spec = pl.BlockSpec((tile_m, B2, Cin), lambda m: (m, 0, 0))
    w_spec = pl.BlockSpec((tile_m, Cin, Cout), lambda m: (m, 0, 0))
    o_spec = pl.BlockSpec((tile_m, B2, Cout), lambda m: (m, 0, 0))

    flops = int(2 * 2 * M * B2 * Cin * Cout)        # two batched matmuls
    bytes_accessed = int(M * B2 * Cin * a_s.dtype.itemsize
                         + 2 * M * Cin * Cout * w_r.dtype.itemsize
                         + M * B2 * Cout * 4)

    return pl.pallas_call(
        _spectral_mul_kernel,
        out_shape=jax.ShapeDtypeStruct((M, B2, Cout), jnp.float32),
        grid_spec=pltpu.PrefetchScalarGridSpec(
            num_scalar_prefetch=0,
            grid=grid,
            in_specs=[a_spec, w_spec, w_spec],
            out_specs=o_spec),
        compiler_params=pltpu.CompilerParams(
            dimension_semantics=("parallel",),       # independent modes; 2 TCs on v7x
            vmem_limit_bytes=vmem_limit),
        cost_estimate=pl.CostEstimate(
            flops=flops, transcendentals=0, bytes_accessed=bytes_accessed),
    )(a_s, w_r, w_i)


# ----------------------------------------------------------------------------
# Weight preparation (do ONCE, cache as layer state -- not per forward call).
# ----------------------------------------------------------------------------
def prepare_spectral_weights(weights1, weights2, modes1, modes2,
                             weights_dtype=jnp.float32):
    """weights*: (Cin, Cout, modes1, modes2) complex64 -> (w_r, w_i): (M, Cin, Cout).

    weights_dtype=jnp.bfloat16 halves the dominant HBM stream (weights) on this
    bandwidth-bound kernel; the kernel casts back to f32 in VMEM before the MXU.
    """
    Cin, Cout = weights1.shape[0], weights1.shape[1]
    mm = modes1 * modes2
    w = jnp.concatenate(
        [jnp.transpose(weights1, (2, 3, 0, 1)).reshape(mm, Cin, Cout),
         jnp.transpose(weights2, (2, 3, 0, 1)).reshape(mm, Cin, Cout)],
        axis=0)                                                  # (M, Cin, Cout) c64
    return (jnp.real(w).astype(weights_dtype),
            jnp.imag(w).astype(weights_dtype))


# ----------------------------------------------------------------------------
# SpectralConv2d forward (takes prepared weights).
# ----------------------------------------------------------------------------
def spectral_conv2d(x, w_r, w_i, modes1, modes2, *, tile_m=None):
    """x: (B, Cin, H, W) f32, w_r/w_i: (2*modes1*modes2, Cin, Cout) real/imag."""
    B, Cin, H, W = x.shape
    Cout = w_r.shape[-1]
    Wf = W // 2 + 1
    if 2 * modes1 > H or modes2 > Wf:
        raise ValueError("retained Fourier corners overlap / exceed the spectrum")

    # TODO(synk): rfft2/irfft2 have no Pallas TPU equivalent; kept as XLA ops.
    x_ft = jnp.fft.rfft2(x)                                      # (B, Cin, H, Wf) c64

    # Gather the two retained-mode corners, move the mode axis in front and stack
    # real over imag along the batch/sublane axis (this is the per-call relayout;
    # the weight relayout is hoisted into prepare_spectral_weights).
    corners = jnp.concatenate(
        [x_ft[:, :, :modes1, :modes2], x_ft[:, :, H - modes1:, :modes2]],
        axis=2)                                                  # (B, Cin, 2*m1, m2)
    M = 2 * modes1 * modes2
    a = jnp.transpose(corners, (2, 3, 0, 1)).reshape(M, B, Cin)  # (M, B, Cin) c64
    a_s = jnp.concatenate([jnp.real(a), jnp.imag(a)], axis=1)    # (M, 2B, Cin) f32
    a_s = a_s.astype(jnp.float32)

    vmem_limit = _vmem_limit_bytes()
    tm = _pick_tile_m(M, 2 * B, Cin, Cout,
                      a_s.dtype.itemsize, w_r.dtype.itemsize, vmem_limit, tile_m)

    o = _spectral_mul_pallas(a_s, w_r, w_i, tm, vmem_limit)      # (M, 2B, Cout) f32

    out = (o[:, :B, :] + 1j * o[:, B:, :]).astype(jnp.complex64)  # (M, B, Cout)
    out = jnp.transpose(out.reshape(2 * modes1, modes2, B, Cout), (2, 3, 0, 1))
    # out: (B, Cout, 2*modes1, modes2); rows [0, m1) = top corner, [m1, 2*m1) = bottom.

    # Assemble the mostly-zero spectrum with pad+concat (no full-size zeros + scatters).
    pad_last = ((0, 0), (0, 0), (0, 0), (0, Wf - modes2))
    out_ft = jnp.concatenate(
        [jnp.pad(out[:, :, :modes1, :], pad_last),
         jnp.zeros((B, Cout, H - 2 * modes1, Wf), dtype=jnp.complex64),
         jnp.pad(out[:, :, modes1:, :], pad_last)],
        axis=2)                                                  # (B, Cout, H, Wf)

    return jnp.fft.irfft2(out_ft, s=(H, W))                      # (B, Cout, H, W) f32


# Pure-JAX reference (mirrors the PyTorch forward) for a sanity check.
def spectral_conv2d_ref(x, weights1, weights2, modes1, modes2):
    B, Cin, H, W = x.shape
    Cout = weights1.shape[1]
    x_ft = jnp.fft.rfft2(x)
    out_ft = jnp.zeros((B, Cout, H, W // 2 + 1), dtype=jnp.complex64)
    out_ft = out_ft.at[:, :, :modes1, :modes2].set(
        jnp.einsum('bixy,ioxy->boxy', x_ft[:, :, :modes1, :modes2], weights1))
    out_ft = out_ft.at[:, :, -modes1:, :modes2].set(
        jnp.einsum('bixy,ioxy->boxy', x_ft[:, :, -modes1:, :modes2], weights2))
    return jnp.fft.irfft2(out_ft, s=(H, W))


if __name__ == "__main__":
    # Small, deterministic example consistent with the module.
    B, Cin, Cout, H, W = 2, 4, 4, 16, 16
    modes1, modes2 = 4, 4

    key = jax.random.PRNGKey(0)
    kx, kw1r, kw1i, kw2r, kw2i = jax.random.split(key, 5)

    x = jax.random.normal(kx, (B, Cin, H, W), dtype=jnp.float32)

    # torch.rand(..., dtype=torch.cfloat) draws real & imag uniformly in [0, 1).
    scale = 1.0 / (Cin * Cout)
    weights1 = scale * (
        jax.random.uniform(kw1r, (Cin, Cout, modes1, modes2), dtype=jnp.float32)
        + 1j * jax.random.uniform(kw1i, (Cin, Cout, modes1, modes2), dtype=jnp.float32)
    ).astype(jnp.complex64)
    weights2 = scale * (
        jax.random.uniform(kw2r, (Cin, Cout, modes1, modes2), dtype=jnp.float32)
        + 1j * jax.random.uniform(kw2i, (Cin, Cout, modes1, modes2), dtype=jnp.float32)
    ).astype(jnp.complex64)

    # Weight re-layout happens once, outside the per-call forward.
    w_r, w_i = prepare_spectral_weights(weights1, weights2, modes1, modes2,
                                        weights_dtype=jnp.float32)
    w_r, w_i = jax.block_until_ready((w_r, w_i))

    # tile_m=8 -> M=32 modes split over a 4-step grid (exercises the pipelined path).
    fwd = jax.jit(lambda xx, wr, wi: spectral_conv2d(xx, wr, wi, modes1, modes2,
                                                     tile_m=8))
    out = jax.block_until_ready(fwd(x, w_r, w_i))

    ref = spectral_conv2d_ref(x, weights1, weights2, modes1, modes2)
    assert out.shape == (B, Cout, H, W), out.shape
    assert out.dtype == jnp.float32, out.dtype
    assert jnp.allclose(out, ref, atol=1e-5, rtol=1e-5), "mismatch vs pure-JAX reference"

    print("KERNEL_OK")
</pallas_src>

<mosaic_0001>
module attributes {stable_mosaic.version = 11 : i64} {
  func.func @_spectral_mul_kernel(%arg0: i32, %arg1: memref<8x4x4xf32, #tpu.memory_space<vmem>>, %arg2: memref<8x4x4xf32, #tpu.memory_space<vmem>>, %arg3: memref<8x4x4xf32, #tpu.memory_space<vmem>>, %arg4: memref<8x4x4xf32, #tpu.memory_space<vmem>>) attributes {dimension_semantics = [#tpu.dimension_semantics<parallel>], iteration_bounds = array<i64: 4>, scalar_prefetch = 0 : i64, scratch_operands = 0 : i64, tpu.core_type = #tpu.core_type<tc>, window_params = [{transform_indices = @transform_0, window_bounds = array<i64: 8, 4, 4>}, {transform_indices = @transform_1, window_bounds = array<i64: 8, 4, 4>}, {transform_indices = @transform_2, window_bounds = array<i64: 8, 4, 4>}, {transform_indices = @transform_3, window_bounds = array<i64: 8, 4, 4>}]} {
    %c0 = arith.constant 0 : index
    %c0_0 = arith.constant 0 : index
    %c0_1 = arith.constant 0 : index
    %0 = vector.load %arg1[%c0, %c0_0, %c0_1] : memref<8x4x4xf32, #tpu.memory_space<vmem>>, vector<8x4x4xf32>
    %c0_2 = arith.constant 0 : index
    %c0_3 = arith.constant 0 : index
    %c0_4 = arith.constant 0 : index
    %1 = vector.load %arg2[%c0_2, %c0_3, %c0_4] : memref<8x4x4xf32, #tpu.memory_space<vmem>>, vector<8x4x4xf32>
    %c0_5 = arith.constant 0 : index
    %c0_6 = arith.constant 0 : index
    %c0_7 = arith.constant 0 : index
    %2 = vector.load %arg3[%c0_5, %c0_6, %c0_7] : memref<8x4x4xf32, #tpu.memory_space<vmem>>, vector<8x4x4xf32>
    %cst = arith.constant dense<0.000000e+00> : vector<8x4x4xf32>
    %3 = tpu.matmul %0, %1, %cst {dimension_numbers = #tpu.dot_dimension_numbers<[2], [1], [1], [2], [0, 0, 0, 1, 1, 2], [0], [0]>} : vector<8x4x4xf32>, vector<8x4x4xf32>, vector<8x4x4xf32> -> vector<8x4x4xf32>
    %cst_8 = arith.constant dense<0.000000e+00> : vector<8x4x4xf32>
    %4 = tpu.matmul %0, %2, %cst_8 {dimension_numbers = #tpu.dot_dimension_numbers<[2], [1], [1], [2], [0, 0, 0, 1, 1, 2], [0], [0]>} : vector<8x4x4xf32>, vector<8x4x4xf32>, vector<8x4x4xf32> -> vector<8x4x4xf32>
    %5 = vector.extract_strided_slice %3 {offsets = [0, 0, 0], sizes = [8, 2, 4], strides = [1, 1, 1]} : vector<8x4x4xf32> to vector<8x2x4xf32>
    %6 = vector.extract_strided_slice %4 {offsets = [0, 2, 0], sizes = [8, 2, 4], strides = [1, 1, 1]} : vector<8x4x4xf32> to vector<8x2x4xf32>
    %7 = arith.subf %5, %6 : vector<8x2x4xf32>
    %c0_9 = arith.constant 0 : index
    %c0_10 = arith.constant 0 : index
    %c0_11 = arith.constant 0 : index
    %8 = vector.load %arg4[%c0_9, %c0_10, %c0_11] : memref<8x4x4xf32, #tpu.memory_space<vmem>>, vector<8x2x4xf32>
    tpu.vector_store %arg4[%c0_9, %c0_10, %c0_11], %7 {strides = array<i32>} : memref<8x4x4xf32, #tpu.memory_space<vmem>>, vector<8x2x4xf32>,
    %9 = vector.extract_strided_slice %4 {offsets = [0, 0, 0], sizes = [8, 2, 4], strides = [1, 1, 1]} : vector<8x4x4xf32> to vector<8x2x4xf32>
    %10 = vector.extract_strided_slice %3 {offsets = [0, 2, 0], sizes = [8, 2, 4], strides = [1, 1, 1]} : vector<8x4x4xf32> to vector<8x2x4xf32>
    %11 = arith.addf %9, %10 : vector<8x2x4xf32>
    %c0_12 = arith.constant 0 : index
    %c2 = arith.constant 2 : index
    %c0_13 = arith.constant 0 : index
    %12 = vector.load %arg4[%c0_12, %c2, %c0_13] : memref<8x4x4xf32, #tpu.memory_space<vmem>>, vector<8x2x4xf32>
    tpu.vector_store %arg4[%c0_12, %c2, %c0_13], %11 {strides = array<i32>} : memref<8x4x4xf32, #tpu.memory_space<vmem>>, vector<8x2x4xf32>,
    return
  }
  func.func @transform_0(%arg0: i32) -> (i32, i32, i32) {
    %c0_i32 = arith.constant 0 : i32
    %c0_i32_0 = arith.constant 0 : i32
    %c0_i32_1 = arith.constant 0 : i32
    return %arg0, %c0_i32, %c0_i32_0 : i32, i32, i32
  }
  func.func @transform_1(%arg0: i32) -> (i32, i32, i32) {
    %c0_i32 = arith.constant 0 : i32
    %c0_i32_0 = arith.constant 0 : i32
    %c0_i32_1 = arith.constant 0 : i32
    return %arg0, %c0_i32, %c0_i32_0 : i32, i32, i32
  }
  func.func @transform_2(%arg0: i32) -> (i32, i32, i32) {
    %c0_i32 = arith.constant 0 : i32
    %c0_i32_0 = arith.constant 0 : i32
    %c0_i32_1 = arith.constant 0 : i32
    return %arg0, %c0_i32, %c0_i32_0 : i32, i32, i32
  }
  func.func @transform_3(%arg0: i32) -> (i32, i32, i32) {
    %c0_i32 = arith.constant 0 : i32
    %c0_i32_0 = arith.constant 0 : i32
    %c0_i32_1 = arith.constant 0 : i32
    return %arg0, %c0_i32, %c0_i32_0 : i32, i32, i32
  }
}

</mosaic_0001>

<bundles_post_ra>
// kernel: reverse.0
= control target key start
LH: loop header
LB: loop body
LE: loop exit
PB: predicated region body
PF: predicated region fallthrough
CT: control target
= control target key end

     0   :  { %v72_v3 = vlaneseq  ;;  %v65_v9 = vld [vmem:[#allocation0 + $0x7] ss:$-1 sm:$0xff]  ;;  %v79_v12 = vld [vmem:[#allocation0 + $0x17] ss:$-1 sm:$0xff]  ;;  %s331_s0 = inlined_call_operand.vmem [shape: f32[2,4,16,7], index: 0, kind: input, shape index: {}]   ;;  %s332_s1 = inlined_call_operand.vmem [shape: f32[2,4,16,7], index: 1, kind: output, shape index: {}]  }
   0x1   :  { %v45_v0 = vld [vmem:[%s331_s0] sm:$0xff]  ;;  %v47_v1 = vld [vmem:[%s331_s0 + $0x8] sm:$0xff]  ;;  %v49_v2 = vld [vmem:[%s331_s0 + $0x10] sm:$0xff]  ;;  %v66_v10 = vrot.slane %v65_v9, 1  ;;  %v80_v14 = vrot.slane %v79_v12, 1 }
   0x2   :  { %46 = vst [vmem:[#allocation0 + $0x8] sm:$0xff] %v45_v0  ;;  %48 = vst [vmem:[#allocation0 + $0x18] sm:$0xff] %v47_v1  ;;  %v51_v4 = vld [vmem:[%s331_s0 + $0x18] sm:$0xff]  ;;  %v53_v5 = vld [vmem:[%s331_s0 + $0x20] sm:$0xff]  ;;  %v73_v11 = vshrl.u32 %v72_v3, 7 }
   0x3   :  { %50 = vst [vmem:[#allocation0 + $0x28] sm:$0xff] %v49_v2  ;;  %v55_v6 = vld [vmem:[%s331_s0 + $0x28] sm:$0xff]  ;;  %52 = vst [vmem:[#allocation0 + $0x38] sm:$0xff] %v51_v4  ;;  %v57_v7 = vld [vmem:[%s331_s0 + $0x30] sm:$0xff] }
   0x4   :  { %54 = vst [vmem:[#allocation0 + $0x48] sm:$0xff] %v53_v5  ;;  %56 = vst [vmem:[#allocation0 + $0x58] sm:$0xff] %v55_v6  ;;  %v59_v8 = vld [vmem:[%s331_s0 + $0x38] sm:$0xff]  ;;  %v93_v13 = vld [vmem:[#allocation0 + $0x27] ss:$-1 sm:$0xff]  ;;  %vm74_vm0 = vcmp.lt.s32.totalorder %v73_v11, 7 }
   0x5   :  { %58 = vst [vmem:[#allocation0 + $0x68] sm:$0xff] %v57_v7  ;;  %60 = vst [vmem:[#allocation0 + $0x78] sm:$0xff] %v59_v8  ;;  %v94_v15 = vrot.slane %v93_v13, 1  ;;  %v107_v16 = vld [vmem:[#allocation0 + $0x37] ss:$-1 sm:$0xff] }
   0x6   :  { %67 = vst [vmem:[#allocation1] sm:$0xff] %v66_v10  ;;  %v108_v17 = vrot.slane %v107_v16, 1  ;;  %v121_v18 = vld [vmem:[#allocation0 + $0x47] ss:$-1 sm:$0xff]  ;;  %v135_v19 = vld [vmem:[#allocation0 + $0x57] ss:$-1 sm:$0xff] }
   0x7   :  { %81 = vst [vmem:[#allocation1 + $0x8] sm:$0xff] %v80_v14  ;;  %95 = vst [vmem:[#allocation1 + $0x10] sm:$0xff] %v94_v15  ;;  %v122_v20 = vrot.slane %v121_v18, 1  ;;  %v136_v21 = vrot.slane %v135_v19, 1  ;;  %v149_v22 = vld [vmem:[#allocation0 + $0x67] ss:$-1 sm:$0xff] }
   0x8   :  { %v163_v23 = vld [vmem:[#allocation0 + $0x77] ss:$-1 sm:$0xff]  ;;  %109 = vst [vmem:[#allocation1 + $0x18] sm:$0xff] %v108_v17  ;;  %v150_v24 = vrot.slane %v149_v22, 1 }
   0x9   :  { %v164_v25 = vrot.slane %v163_v23, 1  ;;  %v70_v26 = vld [vmem:[#allocation0 + $0xf] ss:$-1 sm:$0xff]  ;;  %v84_v27 = vld [vmem:[#allocation0 + $0x1f] ss:$-1 sm:$0xff]  ;;  %123 = vst [vmem:[#allocation1 + $0x20] sm:$0xff] %v122_v20 }
   0xa   :  { %v98_v28 = vld [vmem:[#allocation0 + $0x2f] ss:$-1 sm:$0xff]  ;;  %137 = vst [vmem:[#allocation1 + $0x28] sm:$0xff] %v136_v21  ;;  %v71_v29 = vrot.slane %v70_v26, 1  ;;  %v85_v30 = vrot.slane %v84_v27, 1  ;;  %151 = vst [vmem:[#allocation1 + $0x30] sm:$0xff] %v150_v24 }
   0xb   :  { %v99_v31 = vrot.slane %v98_v28, 1  ;;  %v112_v32 = vld [vmem:[#allocation0 + $0x3f] ss:$-1 sm:$0xff]  ;;  %165 = vst [vmem:[#allocation1 + $0x38] sm:$0xff] %v164_v25  ;;  %v126_v34 = vld [vmem:[#allocation0 + $0x4f] ss:$-1 sm:$0xff] }
   0xc   :  { %v113_v33 = vrot.slane %v112_v32, 1  ;;  %v140_v35 = vld [vmem:[#allocation0 + $0x5f] ss:$-1 sm:$0xff]  ;;  %75 = vst.msk [vmem:[#allocation1] sm:$0xff] %vm74_vm0, %v71_v29  ;;  %89 = vst.msk [vmem:[#allocation1 + $0x8] sm:$0xff] %vm74_vm0, %v85_v30  ;;  %v127_v36 = vrot.slane %v126_v34, 1 }
   0xd   :  { %103 = vst.msk [vmem:[#allocation1 + $0x10] sm:$0xff] %vm74_vm0, %v99_v31  ;;  %v141_v37 = vrot.slane %v140_v35, 1  ;;  %v154_v38 = vld [vmem:[#allocation0 + $0x6f] ss:$-1 sm:$0xff]  ;;  %v168_v39 = vld [vmem:[#allocation0 + $0x7f] ss:$-1 sm:$0xff] }
   0xe   :  { %117 = vst.msk [vmem:[#allocation1 + $0x18] sm:$0xff] %vm74_vm0, %v113_v33  ;;  %v155_v40 = vrot.slane %v154_v38, 1  ;;  %v169_v41 = vrot.slane %v168_v39, 1  ;;  %131 = vst.msk [vmem:[#allocation1 + $0x20] sm:$0xff] %vm74_vm0, %v127_v36 }
   0xf   :  { %145 = vst.msk [vmem:[#allocation1 + $0x28] sm:$0xff] %vm74_vm0, %v141_v37 }
  0x10   :  { %159 = vst.msk [vmem:[#allocation1 + $0x30] sm:$0xff] %vm74_vm0, %v155_v40  ;;  %173 = vst.msk [vmem:[#allocation1 + $0x38] sm:$0xff] %vm74_vm0, %v169_v41 }
  0x13   :  { %v216_v42 = vld [vmem:[#allocation1] sm:$0xff]  ;;  %v218_v43 = vld [vmem:[#allocation1 + $0x8] sm:$0xff] }
  0x14   :  { %v220_v44 = vld [vmem:[#allocation1 + $0x10] sm:$0xff]  ;;  %217 = vst [vmem:[%s332_s1] sm:$0xff] %v216_v42  ;;  %219 = vst [vmem:[%s332_s1 + $0x8] sm:$0xff] %v218_v43 }
  0x15   :  { %221 = vst [vmem:[%s332_s1 + $0x10] sm:$0xff] %v220_v44  ;;  %v222_v45 = vld [vmem:[#allocation1 + $0x18] sm:$0xff]  ;;  %v224_v46 = vld [vmem:[#allocation1 + $0x20] sm:$0xff] }
  0x16   :  { %223 = vst [vmem:[%s332_s1 + $0x18] sm:$0xff] %v222_v45  ;;  %v226_v47 = vld [vmem:[#allocation1 + $0x28] sm:$0xff]  ;;  %225 = vst [vmem:[%s332_s1 + $0x20] sm:$0xff] %v224_v46 }
  0x17   :  { %227 = vst [vmem:[%s332_s1 + $0x28] sm:$0xff] %v226_v47  ;;  %v228_v48 = vld [vmem:[#allocation1 + $0x30] sm:$0xff]  ;;  %v230_v49 = vld [vmem:[#allocation1 + $0x38] sm:$0xff] }
  0x18   :  { %229 = vst [vmem:[%s332_s1 + $0x30] sm:$0xff] %v228_v48  ;;  %231 = vst [vmem:[%s332_s1 + $0x38] sm:$0xff] %v230_v49 }

// kernel: _lambda_.1
= control target key start
LH: loop header
LB: loop body
LE: loop exit
PB: predicated region body
PF: predicated region fallthrough
CT: control target
= control target key end

     0   :  { %s1796_s12 = smov 0   ;;  %s1977_s0 = inlined_call_operand.vmem [shape: f32[32,4,4], index: 0, kind: input, shape index: {}]   ;;  %s1978_s1 = inlined_call_operand.vmem [shape: f32[32,4,4], index: 1, kind: input, shape index: {}]   ;;  %s1979_s2 = inlined_call_operand.vmem [shape: f32[32,4,4], index: 2, kind: input, shape index: {}]   ;;  %s1980_s3 = inlined_call_operand.vmem [shape: f32[32,4,4], index: 3, kind: output, shape index: {}]  }
   0x1 LB: > { %s1597_s13 = sadd.s32 4294967295, %s1772_s12   ;;  %p1601_p0 = scmp.ge.s32.totalorder %s1772_s12, 1  ;;  %s1772_s12 = sphi %s1796_s12, %s13_s12  }
   0x2   : > { %p160_p1 = scmp.lt.s32.totalorder %s1772_s12, 5 }
   0x4   : > { %p161_p2 = pnand %p1601_p0, %p160_p1 }
   0x5   : > { %s1602_s14 = sshll.u32 (!%p161_p2), %s1597_s13, 3 }
   0x6   : > { %164 = sbr.rel (%p161_p2) target bundleno = 242 (0xf2), region = 32  ;;  %p195_p3 = scmp.lt.s32.totalorder (!%p161_p2), %s1602_s14, 31 }
   0xb   : > { %v1774_v0 = vmov 0.0   ;;  %vm1775_vm0 = vmmov 0   ;;  %s1982_s14 = smov (!%p195_p3, %s1602_s14), 31  ;;  %vm246_vm1 = vcmask 1043456   ;;  %vm242_vm2 = vcmask 31744  }
   0xc   : > { %1676 = vmatprep.subr.mxu0 %v1774_v0  ;;  %1681 = vmatprep.subr.mxu1 %v1774_v0  ;;  %s1810_s15 = sshll.u32 %s1982_s14, 2  ;;  %vm1468_vm3 = vcmask 25600  }
   0xd   : > { %1678 = vmatprep.mubr.msk.f32.mxu0 %vm1775_vm0, %v1774_v0  ;;  %1683 = vmatprep.mubr.msk.f32.mxu1 %vm1775_vm0, %v1774_v0  ;;  %s1816_s18 = scalar_lea.vmem %s1978_s1, %s1810_s15  ;;  %s1824_s21 = scalar_lea.vmem %s1977_s0, %s1810_s15 }
   0xe   : > { %v226_v1 = vld [vmem:[%s1816_s18] sm:$0xf]  ;;  %v227_v2 = vld [vmem:[%s1816_s18 + $0x4] sm:$0xf]  ;;  %v228_v3 = vld [vmem:[%s1816_s18 + $0x8] sm:$0xf]  ;;  %s1866_s24 = scalar_lea.vmem %s1979_s2, %s1810_s15  ;;  %s1936_s27 = scalar_lea.vmem %s1980_s3, %s1810_s15 }
   0xf   : > { %1677 = vmatpush3.msk.msra.mxu0 %vm246_vm1, %v226_v1  ;;  %1682 = vmatpush3.msk.msra.mxu1 %vm246_vm1, %v227_v2  ;;  %v218_v4 = vld [vmem:[%s1824_s21] sm:$0xf]  ;;  %v219_v5 = vld [vmem:[%s1824_s21 + $0x4] sm:$0xf]  ;;  %v229_v6 = vld [vmem:[%s1816_s18 + $0xc] sm:$0xf] }
  0x10   : > { %1679 = vmatmul.mubr.msk.f32.vlgmr.msra.gmra.mxu0 %vm242_vm2, %v218_v4  ;;  %1684 = vmatmul.mubr.msk.f32.vlgmr.msra.gmra.mxu1 %vm242_vm2, %v219_v5  ;;  %v220_v7 = vld [vmem:[%s1824_s21 + $0x8] sm:$0xf]  ;;  %v221_v8 = vld [vmem:[%s1824_s21 + $0xc] sm:$0xf]  ;;  %v230_v9 = vld [vmem:[%s1816_s18 + $0x10] sm:$0xf] }
  0x11   : > { %1686 = vmatprep.subr.mxu0 %v1774_v0  ;;  %1691 = vmatprep.subr.mxu1 %v1774_v0  ;;  %v231_v10 = vld [vmem:[%s1816_s18 + $0x14] sm:$0xf]  ;;  %v222_v11 = vld [vmem:[%s1824_s21 + $0x10] sm:$0xf]  ;;  %v232_v13 = vld [vmem:[%s1816_s18 + $0x18] sm:$0xf] }
  0x12   : > { %1687 = vmatpush3.msk.msra.mxu0 %vm246_vm1, %v228_v3  ;;  %1692 = vmatpush3.msk.msra.mxu1 %vm246_vm1, %v229_v6  ;;  %v223_v12 = vld [vmem:[%s1824_s21 + $0x14] sm:$0xf]  ;;  %v233_v14 = vld [vmem:[%s1816_s18 + $0x1c] sm:$0xf]  ;;  %v224_v15 = vld [vmem:[%s1824_s21 + $0x18] sm:$0xf] }
  0x13   : > { %1688 = vmatprep.mubr.msk.f32.mxu0 %vm1775_vm0, %v1774_v0  ;;  %1693 = vmatprep.mubr.msk.f32.mxu1 %vm1775_vm0, %v1774_v0  ;;  %v225_v16 = vld [vmem:[%s1824_s21 + $0x1c] sm:$0xf]  ;;  %v234_v17 = vld [vmem:[%s1866_s24] sm:$0xf]  ;;  %v235_v18 = vld [vmem:[%s1866_s24 + $0x4] sm:$0xf] }
  0x14   : > { %1689 = vmatmul.mubr.msk.f32.vlgmr.msra.gmra.mxu0 %vm242_vm2, %v220_v7  ;;  %1694 = vmatmul.mubr.msk.f32.vlgmr.msra.gmra.mxu1 %vm242_vm2, %v221_v8  ;;  %v236_v19 = vld [vmem:[%s1866_s24 + $0x8] sm:$0xf]  ;;  %v237_v20 = vld [vmem:[%s1866_s24 + $0xc] sm:$0xf]  ;;  %v238_v21 = vld [vmem:[%s1866_s24 + $0x10] sm:$0xf] }
  0x15   : > { %1696 = vmatprep.subr.mxu0 %v1774_v0  ;;  %1701 = vmatprep.subr.mxu1 %v1774_v0  ;;  %v239_v22 = vld [vmem:[%s1866_s24 + $0x14] sm:$0xf]  ;;  %v240_v23 = vld [vmem:[%s1866_s24 + $0x18] sm:$0xf]  ;;  %v241_v24 = vld [vmem:[%s1866_s24 + $0x1c] sm:$0xf] }
  0x16   : > { %1697 = vmatpush3.msk.msra.mxu0 %vm246_vm1, %v230_v9  ;;  %1702 = vmatpush3.msk.msra.mxu1 %vm246_vm1, %v231_v10 }
  0x17   : > { %1698 = vmatprep.mubr.msk.f32.mxu0 %vm1775_vm0, %v1774_v0  ;;  %1703 = vmatprep.mubr.msk.f32.mxu1 %vm1775_vm0, %v1774_v0 }
  0x18   : > { %1699 = vmatmul.mubr.msk.f32.vlgmr.msra.gmra.mxu0 %vm242_vm2, %v222_v11  ;;  %1704 = vmatmul.mubr.msk.f32.vlgmr.msra.gmra.mxu1 %vm242_vm2, %v223_v12 }
  0x19   : > { %1706 = vmatprep.subr.mxu0 %v1774_v0  ;;  %1711 = vmatprep.subr.mxu1 %v1774_v0 }
  0x1a   : > { %1707 = vmatpush3.msk.msra.mxu0 %vm246_vm1, %v232_v13  ;;  %1712 = vmatpush3.msk.msra.mxu1 %vm246_vm1, %v233_v14 }
  0x1b   : > { %1708 = vmatprep.mubr.msk.f32.mxu0 %vm1775_vm0, %v1774_v0  ;;  %1713 = vmatprep.mubr.msk.f32.mxu1 %vm1775_vm0, %v1774_v0 }
  0x1c   : > { %1709 = vmatmul.mubr.msk.f32.vlgmr.msra.gmra.mxu0 %vm242_vm2, %v224_v15  ;;  %1714 = vmatmul.mubr.msk.f32.vlgmr.msra.gmra.mxu1 %vm242_vm2, %v225_v16 }
  0x1d   : > { %1716 = vmatprep.subr.mxu0 %v1774_v0  ;;  %1721 = vmatprep.subr.mxu1 %v1774_v0 }
  0x1e   : > { %1717 = vmatpush3.msk.msra.mxu0 %vm246_vm1, %v234_v17  ;;  %1722 = vmatpush3.msk.msra.mxu1 %vm246_vm1, %v235_v18 }
  0x1f   : > { %1718 = vmatprep.mubr.msk.f32.mxu0 %vm1775_vm0, %v1774_v0  ;;  %1723 = vmatprep.mubr.msk.f32.mxu1 %vm1775_vm0, %v1774_v0 }
  0x20   : > { %1719 = vmatmul.mubr.msk.f32.vlgmr.msra.gmra.mxu0 %vm242_vm2, %v218_v4  ;;  %1724 = vmatmul.mubr.msk.f32.vlgmr.msra.gmra.mxu1 %vm242_vm2, %v219_v5 }
  0x21   : > { %1726 = vmatprep.subr.mxu0 %v1774_v0  ;;  %1731 = vmatprep.subr.mxu1 %v1774_v0 }
  0x22   : > { %1727 = vmatpush3.msk.msra.mxu0 %vm246_vm1, %v236_v19  ;;  %1732 = vmatpush3.msk.msra.mxu1 %vm246_vm1, %v237_v20 }
  0x23   : > { %1728 = vmatprep.mubr.msk.f32.mxu0 %vm1775_vm0, %v1774_v0  ;;  %1733 = vmatprep.mubr.msk.f32.mxu1 %vm1775_vm0, %v1774_v0 }
  0x24   : > { %1729 = vmatmul.mubr.msk.f32.vlgmr.msra.gmra.mxu0 %vm242_vm2, %v220_v7  ;;  %1734 = vmatmul.mubr.msk.f32.vlgmr.msra.gmra.mxu1 %vm242_vm2, %v221_v8 }
  0x25   : > { %1736 = vmatprep.subr.mxu0 %v1774_v0  ;;  %1741 = vmatprep.subr.mxu1 %v1774_v0 }
  0x26   : > { %1737 = vmatpush3.msk.msra.mxu0 %vm246_vm1, %v238_v21  ;;  %1742 = vmatpush3.msk.msra.mxu1 %vm246_vm1, %v239_v22 }
  0x27   : > { %1738 = vmatprep.mubr.msk.f32.mxu0 %vm1775_vm0, %v1774_v0  ;;  %1743 = vmatprep.mubr.msk.f32.mxu1 %vm1775_vm0, %v1774_v0 }
  0x28   : > { %1739 = vmatmul.mubr.msk.f32.vlgmr.msra.gmra.mxu0 %vm242_vm2, %v222_v11  ;;  %1744 = vmatmul.mubr.msk.f32.vlgmr.msra.gmra.mxu1 %vm242_vm2, %v223_v12 }
  0x29   : > { %1746 = vmatprep.subr.mxu0 %v1774_v0  ;;  %1751 = vmatprep.subr.mxu1 %v1774_v0 }
  0x2a   : > { %1747 = vmatpush3.msk.msra.mxu0 %vm246_vm1, %v240_v23  ;;  %1752 = vmatpush3.msk.msra.mxu1 %vm246_vm1, %v241_v24 }
  0x2b   : > { %1748 = vmatprep.mubr.msk.f32.mxu0 %vm1775_vm0, %v1774_v0  ;;  %1753 = vmatprep.mubr.msk.f32.mxu1 %vm1775_vm0, %v1774_v0 }
  0x2c   : > { %1749 = vmatmul.mubr.msk.f32.vlgmr.msra.gmra.mxu0 %vm242_vm2, %v224_v15  ;;  %1754 = vmatmul.mubr.msk.f32.vlgmr.msra.gmra.mxu1 %vm242_vm2, %v225_v16 }
  0xd0   : > { %v316_v25 = vpop.f32.mrf.mxu0  ;;  %v392_v26 = vpop.f32.mrf.mxu1 }
  0xd1   : > { %v1485_v41 = vrot.slane %v316_v25, 2  ;;  %v1486_v42 = vrot.slane %v392_v26, 2 }
  0xd2   : > { %v1680_v27 = vpop.f32.mrf.mxu0  ;;  %v1685_v28 = vpop.f32.mrf.mxu1 }
  0xd4   : > { %v468_v29 = vpop.f32.mrf.mxu0  ;;  %v544_v30 = vpop.f32.mrf.mxu1 }
  0xd5   : > { %v1487_v51 = vrot.slane %v468_v29, 2  ;;  %v1488_v52 = vrot.slane %v544_v30, 2 }
  0xd6   : > { %v1690_v31 = vpop.f32.mrf.mxu0  ;;  %v1695_v32 = vpop.f32.mrf.mxu1 }
  0xd8   : > { %v620_v33 = vpop.f32.mrf.mxu0  ;;  %v696_v34 = vpop.f32.mrf.mxu1 }
  0xd9   : > { %v1489_v63 = vrot.slane %v620_v33, 2  ;;  %v1490_v0 = vrot.slane %v696_v34, 2 }
  0xda   : > { %v1700_v35 = vpop.f32.mrf.mxu0  ;;  %v1705_v36 = vpop.f32.mrf.mxu1 }
  0xdc   : > { %v1928_v37 = vpop.f32.mrf.mxu0  ;;  %v1930_v38 = vpop.f32.mrf.mxu1 }
  0xdd   : > { %v1491_v11 = vrot.slane %v1928_v37, 2  ;;  %v1492_v12 = vrot.slane %v1930_v38, 2 }
  0xde   : > { %v1710_v39 = vpop.f32.mrf.mxu0  ;;  %v1715_v40 = vpop.f32.mrf.mxu1 }
  0xe0   : > { %v921_v43 = vpop.f32.mrf.mxu0  ;;  %v994_v44 = vpop.f32.mrf.mxu1 }
  0xe1   : > { %v1444_v45 = vrot.slane %v921_v43, 2  ;;  %v1501_v46 = vadd.f32 %v1485_v41, %v921_v43  ;;  %v1445_v47 = vrot.slane %v994_v44, 2  ;;  %v1502_v48 = vadd.f32 %v1486_v42, %v994_v44 }
  0xe2   : > { %v1720_v49 = vpop.f32.mrf.mxu0  ;;  %v1725_v50 = vpop.f32.mrf.mxu1 }
  0xe3   : > { %v1460_v53 = vsub.f32 %v316_v25, %v1444_v45  ;;  %1509 = vst.msk [vmem:[%s1936_s27 + $0x2] sm:$0x3] %vm1468_vm3, %v1501_v46  ;;  %v1461_v54 = vsub.f32 %v392_v26, %v1445_v47  ;;  %1510 = vst.msk [vmem:[%s1936_s27 + $0x6] sm:$0x3] %vm1468_vm3, %v1502_v48 }
  0xe4   : > { %v1067_v55 = vpop.f32.mrf.mxu0  ;;  %v1140_v56 = vpop.f32.mrf.mxu1 }
  0xe5   : > { %1469 = vst.msk [vmem:[%s1936_s27] sm:$0x3] %vm1468_vm3, %v1460_v53  ;;  %1470 = vst.msk [vmem:[%s1936_s27 + $0x4] sm:$0x3] %vm1468_vm3, %v1461_v54  ;;  %v1446_v57 = vrot.slane %v1067_v55, 2  ;;  %v1503_v58 = vadd.f32 %v1487_v51, %v1067_v55  ;;  %v1447_v59 = vrot.slane %v1140_v56, 2  ;;  %v1504_v60 = vadd.f32 %v1488_v52, %v1140_v56 }
  0xe6   : > { %v1730_v61 = vpop.f32.mrf.mxu0  ;;  %v1735_v62 = vpop.f32.mrf.mxu1 }
  0xe7   : > { %v1462_v1 = vsub.f32 %v468_v29, %v1446_v57  ;;  %1511 = vst.msk [vmem:[%s1936_s27 + $0xa] sm:$0x3] %vm1468_vm3, %v1503_v58  ;;  %v1463_v2 = vsub.f32 %v544_v30, %v1447_v59  ;;  %1512 = vst.msk [vmem:[%s1936_s27 + $0xe] sm:$0x3] %vm1468_vm3, %v1504_v60 }
  0xe8   : > { %v1213_v3 = vpop.f32.mrf.mxu0  ;;  %v1286_v4 = vpop.f32.mrf.mxu1 }
  0xe9   : > { %1471 = vst.msk [vmem:[%s1936_s27 + $0x8] sm:$0x3] %vm1468_vm3, %v1462_v1  ;;  %1472 = vst.msk [vmem:[%s1936_s27 + $0xc] sm:$0x3] %vm1468_vm3, %v1463_v2  ;;  %v1448_v5 = vrot.slane %v1213_v3, 2  ;;  %v1505_v6 = vadd.f32 %v1489_v63, %v1213_v3  ;;  %v1449_v7 = vrot.slane %v1286_v4, 2  ;;  %v1506_v8 = vadd.f32 %v1490_v0, %v1286_v4 }
  0xea   : > { %v1740_v9 = vpop.f32.mrf.mxu0  ;;  %v1745_v10 = vpop.f32.mrf.mxu1 }
  0xeb   : > { %v1464_v13 = vsub.f32 %v620_v33, %v1448_v5  ;;  %1513 = vst.msk [vmem:[%s1936_s27 + $0x12] sm:$0x3] %vm1468_vm3, %v1505_v6  ;;  %v1465_v14 = vsub.f32 %v696_v34, %v1449_v7  ;;  %1514 = vst.msk [vmem:[%s1936_s27 + $0x16] sm:$0x3] %vm1468_vm3, %v1506_v8 }
  0xec   : > { %v1359_v15 = vpop.f32.mrf.mxu0  ;;  %v1432_v16 = vpop.f32.mrf.mxu1 }
  0xed   : > { %1473 = vst.msk [vmem:[%s1936_s27 + $0x10] sm:$0x3] %vm1468_vm3, %v1464_v13  ;;  %1474 = vst.msk [vmem:[%s1936_s27 + $0x14] sm:$0x3] %vm1468_vm3, %v1465_v14  ;;  %v1450_v17 = vrot.slane %v1359_v15, 2  ;;  %v1507_v18 = vadd.f32 %v1491_v11, %v1359_v15  ;;  %v1451_v19 = vrot.slane %v1432_v16, 2  ;;  %v1508_v20 = vadd.f32 %v1492_v12, %v1432_v16 }
  0xee   : > { %v1750_v21 = vpop.f32.mrf.mxu0  ;;  %v1755_v22 = vpop.f32.mrf.mxu1 }
  0xef   : > { %v1466_v23 = vsub.f32 %v1928_v37, %v1450_v17  ;;  %1515 = vst.msk [vmem:[%s1936_s27 + $0x1a] sm:$0x3] %vm1468_vm3, %v1507_v18  ;;  %v1467_v24 = vsub.f32 %v1930_v38, %v1451_v19  ;;  %1516 = vst.msk [vmem:[%s1936_s27 + $0x1e] sm:$0x3] %vm1468_vm3, %v1508_v20 }
  0xf1   : > { %1475 = vst.msk [vmem:[%s1936_s27 + $0x18] sm:$0x3] %vm1468_vm3, %v1466_v23  ;;  %1476 = vst.msk [vmem:[%s1936_s27 + $0x1c] sm:$0x3] %vm1468_vm3, %v1467_v24 }
  0xf2 PF: > { %s13_s12 = sadd.s32 1, %s1772_s12  }
  0xf3   : > { %p10_p4 = scmp.ge.s32.totalorder %s13_s12, 6  }
  0xf5   :  { %12 = sbr.rel (!%p10_p4) target bundleno = 1 (0x1), region = 68 }

</bundles_post_ra>
